<compile_context>
chip_gen: v6e
topology: v6e:2x2x1
jax: 0.10.0
libtpu: 0.0.40
codegen_flags: <defaults>
</compile_context>

<pallas_src>
import functools

import jax
import jax.numpy as jnp
from jax.experimental import pallas as pl
from jax.experimental.pallas import tpu as pltpu

# Layer widths of the nn.Sequential in SimpleRegressor
HIDDEN_SIZES = [64, 64, 64, 64, 128, 64, 64, 64]

PAD = 128              # lane-dense padded feature width for every layer
DEFAULT_TILE_B = 512   # batch tile for production batches


def _round_up(n, m):
    return (n + m - 1) // m * m


def mlp_kernel(x_ref, w_ref, b_ref, o_ref):
    """x_ref: (TILE_B, PAD) f32, w_ref: (L, PAD, PAD) bf16, b_ref: (L, PAD) f32,
    o_ref: (TILE_B, PAD) f32.

    Whole forward runs on VMEM-resident tiles; the 9-layer loop unrolls at
    trace time.  Padded lanes are exactly zero in weights and biases, so they
    stay zero through every ReLU and feed zero weight rows in the next layer.
    """
    n_layers = w_ref.shape[0]
    h = x_ref[...]                                   # f32 activations
    for i in range(n_layers):                        # static unroll (9 layers)
        w = w_ref[i]                                 # (PAD, PAD) bf16
        b = b_ref[pl.ds(i, 1), :]                    # (1, PAD) f32
        # bf16 x bf16 -> f32 accumulation on the MXU
        h = jnp.dot(h.astype(w_ref.dtype), w,
                    preferred_element_type=jnp.float32)
        h = h + b                                    # f32 bias add (VPU)
        if i < n_layers - 1:                         # ReLU after all but last
            h = jnp.maximum(h, 0.0)
    o_ref[...] = h.astype(o_ref.dtype)               # lane-dense unmasked store


def pack_params(weights, biases, compute_dtype=jnp.bfloat16):
    """Zero-pad every layer to PAD x PAD and stack into single buffers.

    Padding MUST be exactly zero: padded output lanes then remain zero through
    bias-add / ReLU and only ever multiply zero weight rows downstream.
    """
    n_layers = len(weights)
    w_packed = jnp.zeros((n_layers, PAD, PAD), compute_dtype)
    b_packed = jnp.zeros((n_layers, PAD), jnp.float32)
    for i, (w, b) in enumerate(zip(weights, biases)):
        fi, fo = w.shape
        w_packed = w_packed.at[i, :fi, :fo].set(w.astype(compute_dtype))
        b_packed = b_packed.at[i, :fo].set(b.reshape(-1).astype(jnp.float32))
    return w_packed, b_packed


@functools.partial(jax.jit, static_argnames=("n_out", "tile_b"))
def simple_regressor_forward(x, w_packed, b_packed, *, n_out,
                             tile_b=DEFAULT_TILE_B):
    """x: (B, n_in) f32; w_packed: (L, PAD, PAD) bf16; b_packed: (L, PAD) f32."""
    B, n_in = x.shape
    L = w_packed.shape[0]

    # Shrink the batch tile for tiny batches; keep sublane alignment (mult of 8).
    tile_b = min(tile_b, _round_up(B, 8))
    padded_b = _round_up(B, tile_b)

    # Lane-dense, zero-padded input slab (padded lanes hit zero weight rows).
    x_pad = jnp.zeros((padded_b, PAD), jnp.float32).at[:B, :n_in].set(
        x.astype(jnp.float32))

    grid = (padded_b // tile_b,)

    cost = pl.CostEstimate(
        flops=2 * padded_b * L * PAD * PAD,
        transcendentals=0,
        bytes_accessed=(x_pad.size * 4
                        + w_packed.size * w_packed.dtype.itemsize
                        + b_packed.size * 4
                        + padded_b * PAD * 4),
    )

    out_padded = pl.pallas_call(
        mlp_kernel,
        out_shape=jax.ShapeDtypeStruct((padded_b, PAD), jnp.float32),
        grid_spec=pltpu.PrefetchScalarGridSpec(
            num_scalar_prefetch=0,
            grid=grid,
            in_specs=[
                pl.BlockSpec((tile_b, PAD), lambda i: (i, 0)),       # pipelined
                pl.BlockSpec((L, PAD, PAD), lambda i: (0, 0, 0)),    # VMEM-resident
                pl.BlockSpec((L, PAD), lambda i: (0, 0)),            # VMEM-resident
            ],
            out_specs=pl.BlockSpec((tile_b, PAD), lambda i: (i, 0)),  # lane-dense
        ),
        compiler_params=pltpu.CompilerParams(
            dimension_semantics=("parallel",),   # megacore sharding on v7x
        ),
        cost_estimate=cost,
    )(x_pad, w_packed, b_packed)

    return out_padded[:B, :n_out]


def init_params(key, n_in, n_out):
    """Deterministic PyTorch-Linear-style uniform fan-in init (weights stored
    already transposed as (in_features, out_features))."""
    dims = [n_in] + HIDDEN_SIZES + [n_out]
    weights, biases = [], []
    for i in range(len(dims) - 1):
        fan_in, fan_out = dims[i], dims[i + 1]
        key, wk, bk = jax.random.split(key, 3)
        bound = 1.0 / float(fan_in) ** 0.5
        w = jax.random.uniform(wk, (fan_in, fan_out), jnp.float32, -bound, bound)
        b = jax.random.uniform(bk, (fan_out,), jnp.float32, -bound, bound)
        weights.append(w)
        biases.append(b)
    return weights, biases


def reference_forward(x, weights, biases):
    """Pure-JAX reference with the same arithmetic as the kernel:
    bf16 operands into the matmul, f32 accumulation, f32 bias/ReLU."""
    h = x.astype(jnp.float32)
    for i, (w, b) in enumerate(zip(weights, biases)):
        h = jnp.dot(h.astype(jnp.bfloat16), w.astype(jnp.bfloat16),
                    preferred_element_type=jnp.float32) + b.astype(jnp.float32)
        if i < len(weights) - 1:
            h = jnp.maximum(h, 0.0)
    return h


if __name__ == "__main__":
    n_in, n_out, batch = 32, 8, 8

    key = jax.random.PRNGKey(0)
    key, xk = jax.random.split(key)
    x = jax.random.normal(xk, (batch, n_in), jnp.float32)

    weights, biases = init_params(key, n_in, n_out)
    w_packed, b_packed = pack_params(weights, biases)

    out = simple_regressor_forward(x, w_packed, b_packed, n_out=n_out)
    out = jax.block_until_ready(out)

    ref = reference_forward(x, weights, biases)

    assert out.shape == (batch, n_out)
    assert jnp.allclose(out, ref, atol=3e-3, rtol=3e-3), (
        f"max abs err = {jnp.max(jnp.abs(out - ref))}")

    print("KERNEL_OK")
</pallas_src>

<mosaic_0001>
module attributes {stable_mosaic.version = 11 : i64} {
  func.func @mlp_kernel(%arg0: i32, %arg1: memref<8x128xf32, #tpu.memory_space<vmem>>, %arg2: memref<9x128x128xbf16, #tpu.memory_space<vmem>>, %arg3: memref<9x128xf32, #tpu.memory_space<vmem>>, %arg4: memref<8x128xf32, #tpu.memory_space<vmem>>) attributes {dimension_semantics = [#tpu.dimension_semantics<parallel>], iteration_bounds = array<i64: 1>, scalar_prefetch = 0 : i64, scratch_operands = 0 : i64, tpu.core_type = #tpu.core_type<tc>, window_params = [{transform_indices = @transform_0, window_bounds = array<i64: 8, 128>}, {pipeline_mode = #tpu.pipeline_mode<synchronous>, transform_indices = @transform_1, window_bounds = array<i64: 9, 128, 128>}, {pipeline_mode = #tpu.pipeline_mode<synchronous>, transform_indices = @transform_2, window_bounds = array<i64: 9, 128>}, {transform_indices = @transform_3, window_bounds = array<i64: 8, 128>}]} {
    %c0 = arith.constant 0 : index
    %c0_0 = arith.constant 0 : index
    %0 = vector.load %arg1[%c0, %c0_0] : memref<8x128xf32, #tpu.memory_space<vmem>>, vector<8x128xf32>
    %c0_1 = arith.constant 0 : index
    %c0_2 = arith.constant 0 : index
    %c0_3 = arith.constant 0 : index
    %1 = vector.load %arg2[%c0_1, %c0_2, %c0_3] : memref<9x128x128xbf16, #tpu.memory_space<vmem>>, vector<1x128x128xbf16>
    %2 = vector.shape_cast %1 : vector<1x128x128xbf16> to vector<128x128xbf16>
    %c0_4 = arith.constant 0 : index
    %c0_5 = arith.constant 0 : index
    %3 = vector.load %arg3[%c0_4, %c0_5] : memref<9x128xf32, #tpu.memory_space<vmem>>, vector<1x128xf32>
    %4 = arith.truncf %0 : vector<8x128xf32> to vector<8x128xbf16>
    %cst = arith.constant dense<0.000000e+00> : vector<8x128xf32>
    %5 = tpu.matmul %4, %2, %cst {dimension_numbers = #tpu.dot_dimension_numbers<[1], [0], [0], [1], [0, 0, 1, 1], [], []>} : vector<8x128xbf16>, vector<128x128xbf16>, vector<8x128xf32> -> vector<8x128xf32>
    %6 = vector.broadcast %3 : vector<1x128xf32> to vector<8x128xf32>
    %7 = arith.addf %5, %6 : vector<8x128xf32>
    %cst_6 = arith.constant 0.000000e+00 : f32
    %8 = vector.broadcast %cst_6 : f32 to vector<8x128xf32>
    %9 = arith.maximumf %7, %8 : vector<8x128xf32>
    %c1 = arith.constant 1 : index
    %c0_7 = arith.constant 0 : index
    %c0_8 = arith.constant 0 : index
    %10 = vector.load %arg2[%c1, %c0_7, %c0_8] : memref<9x128x128xbf16, #tpu.memory_space<vmem>>, vector<1x128x128xbf16>
    %11 = vector.shape_cast %10 : vector<1x128x128xbf16> to vector<128x128xbf16>
    %c1_9 = arith.constant 1 : index
    %c0_10 = arith.constant 0 : index
    %12 = vector.load %arg3[%c1_9, %c0_10] : memref<9x128xf32, #tpu.memory_space<vmem>>, vector<1x128xf32>
    %13 = arith.truncf %9 : vector<8x128xf32> to vector<8x128xbf16>
    %cst_11 = arith.constant dense<0.000000e+00> : vector<8x128xf32>
    %14 = tpu.matmul %13, %11, %cst_11 {dimension_numbers = #tpu.dot_dimension_numbers<[1], [0], [0], [1], [0, 0, 1, 1], [], []>} : vector<8x128xbf16>, vector<128x128xbf16>, vector<8x128xf32> -> vector<8x128xf32>
    %15 = vector.broadcast %12 : vector<1x128xf32> to vector<8x128xf32>
    %16 = arith.addf %14, %15 : vector<8x128xf32>
    %cst_12 = arith.constant 0.000000e+00 : f32
    %17 = vector.broadcast %cst_12 : f32 to vector<8x128xf32>
    %18 = arith.maximumf %16, %17 : vector<8x128xf32>
    %c2 = arith.constant 2 : index
    %c0_13 = arith.constant 0 : index
    %c0_14 = arith.constant 0 : index
    %19 = vector.load %arg2[%c2, %c0_13, %c0_14] : memref<9x128x128xbf16, #tpu.memory_space<vmem>>, vector<1x128x128xbf16>
    %20 = vector.shape_cast %19 : vector<1x128x128xbf16> to vector<128x128xbf16>
    %c2_15 = arith.constant 2 : index
    %c0_16 = arith.constant 0 : index
    %21 = vector.load %arg3[%c2_15, %c0_16] : memref<9x128xf32, #tpu.memory_space<vmem>>, vector<1x128xf32>
    %22 = arith.truncf %18 : vector<8x128xf32> to vector<8x128xbf16>
    %cst_17 = arith.constant dense<0.000000e+00> : vector<8x128xf32>
    %23 = tpu.matmul %22, %20, %cst_17 {dimension_numbers = #tpu.dot_dimension_numbers<[1], [0], [0], [1], [0, 0, 1, 1], [], []>} : vector<8x128xbf16>, vector<128x128xbf16>, vector<8x128xf32> -> vector<8x128xf32>
    %24 = vector.broadcast %21 : vector<1x128xf32> to vector<8x128xf32>
    %25 = arith.addf %23, %24 : vector<8x128xf32>
    %cst_18 = arith.constant 0.000000e+00 : f32
    %26 = vector.broadcast %cst_18 : f32 to vector<8x128xf32>
    %27 = arith.maximumf %25, %26 : vector<8x128xf32>
    %c3 = arith.constant 3 : index
    %c0_19 = arith.constant 0 : index
    %c0_20 = arith.constant 0 : index
    %28 = vector.load %arg2[%c3, %c0_19, %c0_20] : memref<9x128x128xbf16, #tpu.memory_space<vmem>>, vector<1x128x128xbf16>
    %29 = vector.shape_cast %28 : vector<1x128x128xbf16> to vector<128x128xbf16>
    %c3_21 = arith.constant 3 : index
    %c0_22 = arith.constant 0 : index
    %30 = vector.load %arg3[%c3_21, %c0_22] : memref<9x128xf32, #tpu.memory_space<vmem>>, vector<1x128xf32>
    %31 = arith.truncf %27 : vector<8x128xf32> to vector<8x128xbf16>
    %cst_23 = arith.constant dense<0.000000e+00> : vector<8x128xf32>
    %32 = tpu.matmul %31, %29, %cst_23 {dimension_numbers = #tpu.dot_dimension_numbers<[1], [0], [0], [1], [0, 0, 1, 1], [], []>} : vector<8x128xbf16>, vector<128x128xbf16>, vector<8x128xf32> -> vector<8x128xf32>
    %33 = vector.broadcast %30 : vector<1x128xf32> to vector<8x128xf32>
    %34 = arith.addf %32, %33 : vector<8x128xf32>
    %cst_24 = arith.constant 0.000000e+00 : f32
    %35 = vector.broadcast %cst_24 : f32 to vector<8x128xf32>
    %36 = arith.maximumf %34, %35 : vector<8x128xf32>
    %c4 = arith.constant 4 : index
    %c0_25 = arith.constant 0 : index
    %c0_26 = arith.constant 0 : index
    %37 = vector.load %arg2[%c4, %c0_25, %c0_26] : memref<9x128x128xbf16, #tpu.memory_space<vmem>>, vector<1x128x128xbf16>
    %38 = vector.shape_cast %37 : vector<1x128x128xbf16> to vector<128x128xbf16>
    %c4_27 = arith.constant 4 : index
    %c0_28 = arith.constant 0 : index
    %39 = vector.load %arg3[%c4_27, %c0_28] : memref<9x128xf32, #tpu.memory_space<vmem>>, vector<1x128xf32>
    %40 = arith.truncf %36 : vector<8x128xf32> to vector<8x128xbf16>
    %cst_29 = arith.constant dense<0.000000e+00> : vector<8x128xf32>
    %41 = tpu.matmul %40, %38, %cst_29 {dimension_numbers = #tpu.dot_dimension_numbers<[1], [0], [0], [1], [0, 0, 1, 1], [], []>} : vector<8x128xbf16>, vector<128x128xbf16>, vector<8x128xf32> -> vector<8x128xf32>
    %42 = vector.broadcast %39 : vector<1x128xf32> to vector<8x128xf32>
    %43 = arith.addf %41, %42 : vector<8x128xf32>
    %cst_30 = arith.constant 0.000000e+00 : f32
    %44 = vector.broadcast %cst_30 : f32 to vector<8x128xf32>
    %45 = arith.maximumf %43, %44 : vector<8x128xf32>
    %c5 = arith.constant 5 : index
    %c0_31 = arith.constant 0 : index
    %c0_32 = arith.constant 0 : index
    %46 = vector.load %arg2[%c5, %c0_31, %c0_32] : memref<9x128x128xbf16, #tpu.memory_space<vmem>>, vector<1x128x128xbf16>
    %47 = vector.shape_cast %46 : vector<1x128x128xbf16> to vector<128x128xbf16>
    %c5_33 = arith.constant 5 : index
    %c0_34 = arith.constant 0 : index
    %48 = vector.load %arg3[%c5_33, %c0_34] : memref<9x128xf32, #tpu.memory_space<vmem>>, vector<1x128xf32>
    %49 = arith.truncf %45 : vector<8x128xf32> to vector<8x128xbf16>
    %cst_35 = arith.constant dense<0.000000e+00> : vector<8x128xf32>
    %50 = tpu.matmul %49, %47, %cst_35 {dimension_numbers = #tpu.dot_dimension_numbers<[1], [0], [0], [1], [0, 0, 1, 1], [], []>} : vector<8x128xbf16>, vector<128x128xbf16>, vector<8x128xf32> -> vector<8x128xf32>
    %51 = vector.broadcast %48 : vector<1x128xf32> to vector<8x128xf32>
    %52 = arith.addf %50, %51 : vector<8x128xf32>
    %cst_36 = arith.constant 0.000000e+00 : f32
    %53 = vector.broadcast %cst_36 : f32 to vector<8x128xf32>
    %54 = arith.maximumf %52, %53 : vector<8x128xf32>
    %c6 = arith.constant 6 : index
    %c0_37 = arith.constant 0 : index
    %c0_38 = arith.constant 0 : index
    %55 = vector.load %arg2[%c6, %c0_37, %c0_38] : memref<9x128x128xbf16, #tpu.memory_space<vmem>>, vector<1x128x128xbf16>
    %56 = vector.shape_cast %55 : vector<1x128x128xbf16> to vector<128x128xbf16>
    %c6_39 = arith.constant 6 : index
    %c0_40 = arith.constant 0 : index
    %57 = vector.load %arg3[%c6_39, %c0_40] : memref<9x128xf32, #tpu.memory_space<vmem>>, vector<1x128xf32>
    %58 = arith.truncf %54 : vector<8x128xf32> to vector<8x128xbf16>
    %cst_41 = arith.constant dense<0.000000e+00> : vector<8x128xf32>
    %59 = tpu.matmul %58, %56, %cst_41 {dimension_numbers = #tpu.dot_dimension_numbers<[1], [0], [0], [1], [0, 0, 1, 1], [], []>} : vector<8x128xbf16>, vector<128x128xbf16>, vector<8x128xf32> -> vector<8x128xf32>
    %60 = vector.broadcast %57 : vector<1x128xf32> to vector<8x128xf32>
    %61 = arith.addf %59, %60 : vector<8x128xf32>
    %cst_42 = arith.constant 0.000000e+00 : f32
    %62 = vector.broadcast %cst_42 : f32 to vector<8x128xf32>
    %63 = arith.maximumf %61, %62 : vector<8x128xf32>
    %c7 = arith.constant 7 : index
    %c0_43 = arith.constant 0 : index
    %c0_44 = arith.constant 0 : index
    %64 = vector.load %arg2[%c7, %c0_43, %c0_44] : memref<9x128x128xbf16, #tpu.memory_space<vmem>>, vector<1x128x128xbf16>
    %65 = vector.shape_cast %64 : vector<1x128x128xbf16> to vector<128x128xbf16>
    %c7_45 = arith.constant 7 : index
    %c0_46 = arith.constant 0 : index
    %66 = vector.load %arg3[%c7_45, %c0_46] : memref<9x128xf32, #tpu.memory_space<vmem>>, vector<1x128xf32>
    %67 = arith.truncf %63 : vector<8x128xf32> to vector<8x128xbf16>
    %cst_47 = arith.constant dense<0.000000e+00> : vector<8x128xf32>
    %68 = tpu.matmul %67, %65, %cst_47 {dimension_numbers = #tpu.dot_dimension_numbers<[1], [0], [0], [1], [0, 0, 1, 1], [], []>} : vector<8x128xbf16>, vector<128x128xbf16>, vector<8x128xf32> -> vector<8x128xf32>
    %69 = vector.broadcast %66 : vector<1x128xf32> to vector<8x128xf32>
    %70 = arith.addf %68, %69 : vector<8x128xf32>
    %cst_48 = arith.constant 0.000000e+00 : f32
    %71 = vector.broadcast %cst_48 : f32 to vector<8x128xf32>
    %72 = arith.maximumf %70, %71 : vector<8x128xf32>
    %c8 = arith.constant 8 : index
    %c0_49 = arith.constant 0 : index
    %c0_50 = arith.constant 0 : index
    %73 = vector.load %arg2[%c8, %c0_49, %c0_50] : memref<9x128x128xbf16, #tpu.memory_space<vmem>>, vector<1x128x128xbf16>
    %74 = vector.shape_cast %73 : vector<1x128x128xbf16> to vector<128x128xbf16>
    %c8_51 = arith.constant 8 : index
    %c0_52 = arith.constant 0 : index
    %75 = vector.load %arg3[%c8_51, %c0_52] : memref<9x128xf32, #tpu.memory_space<vmem>>, vector<1x128xf32>
    %76 = arith.truncf %72 : vector<8x128xf32> to vector<8x128xbf16>
    %cst_53 = arith.constant dense<0.000000e+00> : vector<8x128xf32>
    %77 = tpu.matmul %76, %74, %cst_53 {dimension_numbers = #tpu.dot_dimension_numbers<[1], [0], [0], [1], [0, 0, 1, 1], [], []>} : vector<8x128xbf16>, vector<128x128xbf16>, vector<8x128xf32> -> vector<8x128xf32>
    %78 = vector.broadcast %75 : vector<1x128xf32> to vector<8x128xf32>
    %79 = arith.addf %77, %78 : vector<8x128xf32>
    %c0_54 = arith.constant 0 : index
    %c0_55 = arith.constant 0 : index
    %80 = vector.load %arg4[%c0_54, %c0_55] : memref<8x128xf32, #tpu.memory_space<vmem>>, vector<8x128xf32>
    tpu.vector_store %arg4[%c0_54, %c0_55], %79 {strides = array<i32>} : memref<8x128xf32, #tpu.memory_space<vmem>>, vector<8x128xf32>,
    return
  }
  func.func @transform_0(%arg0: i32) -> (i32, i32) {
    %c0_i32 = arith.constant 0 : i32
    %c0_i32_0 = arith.constant 0 : i32
    return %arg0, %c0_i32 : i32, i32
  }
  func.func @transform_1(%arg0: i32) -> (i32, i32, i32) {
    %c0_i32 = arith.constant 0 : i32
    %c0_i32_0 = arith.constant 0 : i32
    %c0_i32_1 = arith.constant 0 : i32
    %c0_i32_2 = arith.constant 0 : i32
    return %c0_i32, %c0_i32_0, %c0_i32_1 : i32, i32, i32
  }
  func.func @transform_2(%arg0: i32) -> (i32, i32) {
    %c0_i32 = arith.constant 0 : i32
    %c0_i32_0 = arith.constant 0 : i32
    %c0_i32_1 = arith.constant 0 : i32
    return %c0_i32, %c0_i32_0 : i32, i32
  }
  func.func @transform_3(%arg0: i32) -> (i32, i32) {
    %c0_i32 = arith.constant 0 : i32
    %c0_i32_0 = arith.constant 0 : i32
    return %arg0, %c0_i32 : i32, i32
  }
}

</mosaic_0001>

<bundles_post_ra>
// kernel: simple_regressor_forward.1
= control target key start
LH: loop header
LB: loop body
LE: loop exit
PB: predicated region body
PF: predicated region fallthrough
CT: control target
= control target key end

     0   :  { %8 = vsyncpa [#allocation3], 0  ;;  %s1669_s0 = inlined_call_operand.vmem [shape: f32[8,128], index: 0, kind: input, shape index: {}]   ;;  %s1670_s1 = inlined_call_operand.hbm [shape: bf16[9,128,128], index: 1, kind: input, shape index: {}]   ;;  %s1671_s2 = inlined_call_operand.vmem [shape: f32[9,128], index: 2, kind: input, shape index: {}]   ;;  %s1672_s3 = inlined_call_operand.hbm [shape: f32[8,128], index: 3, kind: output, shape index: {}]  }
   0x1   :  { %9 = vsyncpa [#allocation4], 0  ;;  %s1517_s12 = smov [#allocation2]  }
   0x2   :  { %s17_s13 = sshll.u32 %s1517_s12, 4  ;;  %s18_s13 = int_to_ptr.vmem [resolvable:$true] %s17_s13 }
   0x3   :  { %s1481_s14 = scalar_lea.vmem %s18_s13, 9216  ;;  %p1486_p1 = scmp.lt.s32.totalorder %s18_s13, %s18_s13 }
   0x4   :  { %p1482_p0 = scmp.ne.s32.totalorder %s18_s13, %s1481_s14  ;;  %p1487_p2 = scmp.lt.s32.totalorder %s1481_s14, %s1481_s14 }
   0x6   :  { %p1488_p3 = por %p1487_p2, %p1486_p1 }
   0x8   :  { %p1489_p4 = pnand %p1488_p3, %p1482_p0 }
   0xa   :  { %1492 = shalt.err (!%p1489_p4)
}
   0xb   :  { %s1518_s15 = smov 64   ;;  %s1519_s16 = smov 4  }
   0xc   :  { %23 = dma.hbm_to_vmem [thread:$0]  %s1670_s1, 9216, %s18_s13, [#allocation3], %s1518_s15, %s1518_s15, %s1519_s16  }
   0xd   :  { %1513 = dma.done.wait [#allocation3], 9216  }
   0xe   :  { %1514 = vsyncadd [#allocation3], 4294958080  ;;  %v1520_v0 = vmov 0.0   ;;  %vm1521_vm0 = vmmov 0   ;;  %v1401_v1 = vld [vmem:[#allocation2 + $0x38] sm:$0xff]   ;;  %v1402_v2 = vld [vmem:[#allocation2 + $0x30] sm:$0xff]  }
   0xf   :  { %1215 = vmatprep.subr.bf16.mxu0 %v1520_v0  ;;  %1231 = vmatprep.mubr.msk.bf16.mxu0 %vm1521_vm0, %v1520_v0  ;;  %v1403_v3 = vld [vmem:[#allocation2 + $0x28] sm:$0xff]   ;;  %v1409_v4 = vld [vmem:[#allocation2 + $0x78] sm:$0xff]   ;;  %v1404_v5 = vld [vmem:[#allocation2 + $0x20] sm:$0xff]   ;;  %s1522_s10 = smov [#allocation5]  }
  0x10   :  { %1235 = vmatprep.subr.bf16.mxu1 %v1520_v0  ;;  %1251 = vmatprep.mubr.msk.bf16.mxu1 %vm1521_vm0, %v1520_v0  ;;  %v1410_v6 = vld [vmem:[#allocation2 + $0x70] sm:$0xff]   ;;  %v1405_v7 = vld [vmem:[#allocation2 + $0x18] sm:$0xff]   ;;  %v1411_v8 = vld [vmem:[#allocation2 + $0x68] sm:$0xff]   ;;  %s1044_s11 = sshll.u32 %s1522_s10, 4  ;;  %s1045_s11 = int_to_ptr.vmem [resolvable:$true] %s1044_s11 }
  0x11   :  { %1216 = vmatpush3.bf16.msra.mxu0 %v1401_v1  ;;  %1236 = vmatpush3.bf16.msra.mxu1 %v1409_v4  ;;  %v1406_v9 = vld [vmem:[#allocation2 + $0x10] sm:$0xff]   ;;  %v1412_v10 = vld [vmem:[#allocation2 + $0x60] sm:$0xff]   ;;  %v1407_v11 = vld [vmem:[#allocation2 + $0x8] sm:$0xff]   ;;  %s1493_s12 = scalar_lea.vmem %s1045_s11, 128  ;;  %p1498_p6 = scmp.lt.s32.totalorder %s1045_s11, %s1045_s11 }
  0x12   :  { %1217 = vmatprep.subr.bf16.mxu0 %v1520_v0  ;;  %1237 = vmatprep.subr.bf16.mxu1 %v1520_v0  ;;  %v1413_v12 = vld [vmem:[#allocation2 + $0x58] sm:$0xff]   ;;  %v1408_v13 = vld [vmem:[#allocation2] sm:$0xff]   ;;  %v1414_v15 = vld [vmem:[#allocation2 + $0x50] sm:$0xff]   ;;  %p1494_p5 = scmp.ne.s32.totalorder %s1045_s11, %s1493_s12  ;;  %p1499_p7 = scmp.lt.s32.totalorder %s1493_s12, %s1493_s12 }
  0x13   :  { %v30_v14 = vld [vmem:[%s1669_s0] sm:$0xff]  ;;  %v1415_v17 = vld [vmem:[#allocation2 + $0x48] sm:$0xff]   ;;  %v1417_v19 = vld [vmem:[#allocation2 + $0xb8] sm:$0xff]  }
  0x14   :  { %v48_v16 = vpack.c.bf16 %v30_v14, %v30_v14  ;;  %v1416_v18 = vld [vmem:[#allocation2 + $0x40] sm:$0xff]   ;;  %v1418_v20 = vld [vmem:[#allocation2 + $0xb0] sm:$0xff]   ;;  %v1419_v21 = vld [vmem:[#allocation2 + $0xa8] sm:$0xff]   ;;  %p1500_p8 = por %p1499_p7, %p1498_p6 }
  0x15   :  { %1218 = vmatpush3.bf16.msra.mxu0 %v1402_v2  ;;  %1238 = vmatpush3.bf16.msra.mxu1 %v1410_v6  ;;  %v1420_v22 = vld [vmem:[#allocation2 + $0xa0] sm:$0xff]   ;;  %v1421_v23 = vld [vmem:[#allocation2 + $0x98] sm:$0xff]   ;;  %v1422_v24 = vld [vmem:[#allocation2 + $0x90] sm:$0xff]  }
  0x16   :  { %1219 = vmatprep.subr.bf16.mxu0 %v1520_v0  ;;  %1239 = vmatprep.subr.bf16.mxu1 %v1520_v0  ;;  %v1053_v25 = vld [vmem:[%s1671_s2] ss:$0 sm:$0xff]  ;;  %v1423_v33 = vld [vmem:[#allocation2 + $0x88] sm:$0xff]   ;;  %v1425_v35 = vld [vmem:[#allocation2 + $0xf8] sm:$0xff]   ;;  %p1501_p9 = pnand %p1500_p8, %p1494_p5 }
  0x17   :  { %v1424_v34 = vld [vmem:[#allocation2 + $0x80] sm:$0xff]   ;;  %v1426_v36 = vld [vmem:[#allocation2 + $0xf0] sm:$0xff]   ;;  %v1427_v37 = vld [vmem:[#allocation2 + $0xe8] sm:$0xff]  }
  0x18   :  { %v1428_v38 = vld [vmem:[#allocation2 + $0xe0] sm:$0xff]   ;;  %v1429_v39 = vld [vmem:[#allocation2 + $0xd8] sm:$0xff]   ;;  %v1430_v40 = vld [vmem:[#allocation2 + $0xd0] sm:$0xff]  }
  0x19   :  { %1220 = vmatpush3.bf16.msra.mxu0 %v1403_v3  ;;  %1240 = vmatpush3.bf16.msra.mxu1 %v1411_v8  ;;  %v1062_v41 = vld [vmem:[%s1671_s2 + $0x1] ss:$0 sm:$0xff]  ;;  %v1431_v49 = vld [vmem:[#allocation2 + $0xc8] sm:$0xff]   ;;  %v1433_v51 = vld [vmem:[#allocation2 + $0x138] sm:$0xff]  }
  0x1a   :  { %1221 = vmatprep.subr.bf16.mxu0 %v1520_v0  ;;  %1241 = vmatprep.subr.bf16.mxu1 %v1520_v0  ;;  %v1432_v50 = vld [vmem:[#allocation2 + $0xc0] sm:$0xff]   ;;  %v1434_v52 = vld [vmem:[#allocation2 + $0x130] sm:$0xff]   ;;  %v1435_v53 = vld [vmem:[#allocation2 + $0x128] sm:$0xff]  }
  0x1b   :  { %v1436_v54 = vld [vmem:[#allocation2 + $0x120] sm:$0xff]   ;;  %v1437_v55 = vld [vmem:[#allocation2 + $0x118] sm:$0xff]   ;;  %v1438_v56 = vld [vmem:[#allocation2 + $0x110] sm:$0xff]  }
  0x1c   :  { %v1071_v57 = vld [vmem:[%s1671_s2 + $0x2] ss:$0 sm:$0xff]  ;;  %v1439_v2 = vld [vmem:[#allocation2 + $0x108] sm:$0xff]   ;;  %v1441_v4 = vld [vmem:[#allocation2 + $0x178] sm:$0xff]  }
  0x1d   :  { %1222 = vmatpush3.bf16.msra.mxu0 %v1404_v5  ;;  %1242 = vmatpush3.bf16.msra.mxu1 %v1412_v10  ;;  %v1440_v3 = vld [vmem:[#allocation2 + $0x100] sm:$0xff]   ;;  %v1442_v5 = vld [vmem:[#allocation2 + $0x170] sm:$0xff]   ;;  %v1443_v6 = vld [vmem:[#allocation2 + $0x168] sm:$0xff]  }
  0x1e   :  { %1223 = vmatprep.subr.bf16.mxu0 %v1520_v0  ;;  %1243 = vmatprep.subr.bf16.mxu1 %v1520_v0  ;;  %v1445_v8 = vld [vmem:[#allocation2 + $0x158] sm:$0xff]   ;;  %v1080_v10 = vld [vmem:[%s1671_s2 + $0x3] ss:$0 sm:$0xff] }
  0x21   :  { %1224 = vmatpush3.bf16.msra.mxu0 %v1405_v7  ;;  %1244 = vmatpush3.bf16.msra.mxu1 %v1413_v12  ;;  %v1444_v7 = vld [vmem:[#allocation2 + $0x160] sm:$0xff]  }
  0x22   :  { %1225 = vmatprep.subr.bf16.mxu0 %v1520_v0  ;;  %1245 = vmatprep.subr.bf16.mxu1 %v1520_v0 }
  0x25   :  { %1226 = vmatpush3.bf16.msra.mxu0 %v1406_v9  ;;  %1246 = vmatpush3.bf16.msra.mxu1 %v1414_v15  ;;  %v1446_v9 = vld [vmem:[#allocation2 + $0x150] sm:$0xff]  }
  0x26   :  { %1227 = vmatprep.subr.bf16.mxu0 %v1520_v0  ;;  %1247 = vmatprep.subr.bf16.mxu1 %v1520_v0 }
  0x29   :  { %1228 = vmatpush3.bf16.msra.mxu0 %v1407_v11  ;;  %1248 = vmatpush3.bf16.msra.mxu1 %v1415_v17 }
  0x2a   :  { %1229 = vmatprep.subr.bf16.mxu0 %v1520_v0  ;;  %1249 = vmatprep.subr.bf16.mxu1 %v1520_v0 }
  0x2d   :  { %1230 = vmatpush3.bf16.msra.mxu0 %v1408_v13  ;;  %1250 = vmatpush3.bf16.msra.mxu1 %v1416_v18  ;;  %v1447_v18 = vld [vmem:[#allocation2 + $0x148] sm:$0xff]  }
  0x2e   :  { %1255 = vmatprep.subr.bf16.mxu0 %v1520_v0  ;;  %1275 = vmatprep.subr.bf16.mxu1 %v1520_v0 }
  0x30   :  { %1232 = vmatmul.mubr.bf16.vlgmr.msra.gmra.mxu0 %v48_v16 }
  0x31   :  { %1271 = vmatprep.mubr.msk.bf16.mxu0 %vm1521_vm0, %v1520_v0  ;;  %1256 = vmatpush3.bf16.msra.mxu0 %v1417_v19  ;;  %v1448_v19 = vld [vmem:[#allocation2 + $0x140] sm:$0xff]  }
  0x32   :  { %1257 = vmatprep.subr.bf16.mxu0 %v1520_v0 }
  0x35   :  { %1258 = vmatpush3.bf16.msra.mxu0 %v1418_v20  ;;  %v1449_v20 = vld [vmem:[#allocation2 + $0x1b8] sm:$0xff]  }
  0x36   :  { %1259 = vmatprep.subr.bf16.mxu0 %v1520_v0 }
  0x39   :  { %1260 = vmatpush3.bf16.msra.mxu0 %v1419_v21  ;;  %v1450_v21 = vld [vmem:[#allocation2 + $0x1b0] sm:$0xff]  }
  0x3a   :  { %1261 = vmatprep.subr.bf16.mxu0 %v1520_v0 }
  0x3d   :  { %1262 = vmatpush3.bf16.msra.mxu0 %v1420_v22  ;;  %v1451_v22 = vld [vmem:[#allocation2 + $0x1a8] sm:$0xff]  }
  0x3e   :  { %1263 = vmatprep.subr.bf16.mxu0 %v1520_v0 }
  0x41   :  { %1264 = vmatpush3.bf16.msra.mxu0 %v1421_v23  ;;  %v1452_v23 = vld [vmem:[#allocation2 + $0x1a0] sm:$0xff]  }
  0x42   :  { %1265 = vmatprep.subr.bf16.mxu0 %v1520_v0 }
  0x45   :  { %1266 = vmatpush3.bf16.msra.mxu0 %v1422_v24  ;;  %v1453_v24 = vld [vmem:[#allocation2 + $0x198] sm:$0xff]  }
  0x46   :  { %1267 = vmatprep.subr.bf16.mxu0 %v1520_v0 }
  0x49   :  { %1268 = vmatpush3.bf16.msra.mxu0 %v1423_v33 }
  0x4a   :  { %1269 = vmatprep.subr.bf16.mxu0 %v1520_v0 }
  0x4d   :  { %1270 = vmatpush3.bf16.msra.mxu0 %v1424_v34  ;;  %v1455_v34 = vld [vmem:[#allocation2 + $0x188] sm:$0xff]  }
  0x4e   :  { %1295 = vmatprep.subr.bf16.mxu0 %v1520_v0 }
  0xf0   :  { %v135_v26 = vpop.f32.mrf.mxu0 }
  0xf1   :  { %v136_v27 = vadd.f32 %v1053_v25, %v135_v26  ;;  %v1454_v25 = vld [vmem:[#allocation2 + $0x190] sm:$0xff]   ;;  %v1089_v26 = vld [vmem:[%s1671_s2 + $0x4] ss:$0 sm:$0xff] }
  0xf2   :  { %v1233_v28 = vpop.f32.mrf.mxu0 }
  0xf3   :  { %v141_v29 = vmax.f32 %v136_v27, 0.0 }
  0xf4   :  { %v138_v30 = vpop.f32.mrf.mxu0 }
  0xf5   :  { %v160_v31 = vpack.c.bf16 %v141_v29, %v141_v29 }
  0xf6   :  { %v1234_v32 = vpop.f32.mrf.mxu0 }
  0xf7   :  { %1252 = vmatmul.mubr.bf16.vlgmr.msra.gmra.mxu1 %v160_v31 }
  0xf8   :  { %1291 = vmatprep.mubr.msk.bf16.mxu1 %vm1521_vm0, %v1520_v0  ;;  %1276 = vmatpush3.bf16.msra.mxu1 %v1425_v35  ;;  %v1456_v35 = vld [vmem:[#allocation2 + $0x180] sm:$0xff]  }
  0xf9   :  { %1277 = vmatprep.subr.bf16.mxu1 %v1520_v0 }
  0xfc   :  { %1278 = vmatpush3.bf16.msra.mxu1 %v1426_v36  ;;  %v1457_v36 = vld [vmem:[#allocation2 + $0x1f8] sm:$0xff]  }
  0xfd   :  { %1279 = vmatprep.subr.bf16.mxu1 %v1520_v0 }
 0x100   :  { %1280 = vmatpush3.bf16.msra.mxu1 %v1427_v37  ;;  %v1458_v37 = vld [vmem:[#allocation2 + $0x1f0] sm:$0xff]  }
 0x101   :  { %1281 = vmatprep.subr.bf16.mxu1 %v1520_v0 }
 0x104   :  { %1282 = vmatpush3.bf16.msra.mxu1 %v1428_v38  ;;  %v1459_v38 = vld [vmem:[#allocation2 + $0x1e8] sm:$0xff]  }
 0x105   :  { %1283 = vmatprep.subr.bf16.mxu1 %v1520_v0 }
 0x108   :  { %1284 = vmatpush3.bf16.msra.mxu1 %v1429_v39  ;;  %v1460_v39 = vld [vmem:[#allocation2 + $0x1e0] sm:$0xff]  }
 0x109   :  { %1285 = vmatprep.subr.bf16.mxu1 %v1520_v0 }
 0x10c   :  { %1286 = vmatpush3.bf16.msra.mxu1 %v1430_v40  ;;  %v1461_v40 = vld [vmem:[#allocation2 + $0x1d8] sm:$0xff]  }
 0x10d   :  { %1287 = vmatprep.subr.bf16.mxu1 %v1520_v0 }
 0x110   :  { %1288 = vmatpush3.bf16.msra.mxu1 %v1431_v49 }
 0x111   :  { %1289 = vmatprep.subr.bf16.mxu1 %v1520_v0 }
 0x114   :  { %1290 = vmatpush3.bf16.msra.mxu1 %v1432_v50  ;;  %v1463_v50 = vld [vmem:[#allocation2 + $0x1c8] sm:$0xff]  }
 0x115   :  { %1315 = vmatprep.subr.bf16.mxu1 %v1520_v0 }
 0x1b7   :  { %v247_v42 = vpop.f32.mrf.mxu1 }
 0x1b8   :  { %v248_v43 = vadd.f32 %v1062_v41, %v247_v42  ;;  %v1462_v41 = vld [vmem:[#allocation2 + $0x1d0] sm:$0xff]   ;;  %v1098_v42 = vld [vmem:[%s1671_s2 + $0x5] ss:$0 sm:$0xff] }
 0x1b9   :  { %v1253_v44 = vpop.f32.mrf.mxu1 }
 0x1ba   :  { %v253_v45 = vmax.f32 %v248_v43, 0.0 }
 0x1bb   :  { %v250_v46 = vpop.f32.mrf.mxu1 }
 0x1bc   :  { %v272_v47 = vpack.c.bf16 %v253_v45, %v253_v45 }
 0x1bd   :  { %v1254_v48 = vpop.f32.mrf.mxu1 }
 0x1be   :  { %1272 = vmatmul.mubr.bf16.vlgmr.msra.gmra.mxu0 %v272_v47 }
 0x1bf   :  { %1311 = vmatprep.mubr.msk.bf16.mxu0 %vm1521_vm0, %v1520_v0  ;;  %1296 = vmatpush3.bf16.msra.mxu0 %v1433_v51  ;;  %v1464_v51 = vld [vmem:[#allocation2 + $0x1c0] sm:$0xff]  }
 0x1c0   :  { %1297 = vmatprep.subr.bf16.mxu0 %v1520_v0 }
 0x1c3   :  { %1298 = vmatpush3.bf16.msra.mxu0 %v1434_v52  ;;  %v1465_v52 = vld [vmem:[#allocation2 + $0x238] sm:$0xff]  }
 0x1c4   :  { %1299 = vmatprep.subr.bf16.mxu0 %v1520_v0 }
 0x1c7   :  { %1300 = vmatpush3.bf16.msra.mxu0 %v1435_v53  ;;  %v1466_v53 = vld [vmem:[#allocation2 + $0x230] sm:$0xff]  }
 0x1c8   :  { %1301 = vmatprep.subr.bf16.mxu0 %v1520_v0 }
 0x1cb   :  { %1302 = vmatpush3.bf16.msra.mxu0 %v1436_v54  ;;  %v1467_v54 = vld [vmem:[#allocation2 + $0x228] sm:$0xff]  }
 0x1cc   :  { %1303 = vmatprep.subr.bf16.mxu0 %v1520_v0 }
 0x1cf   :  { %1304 = vmatpush3.bf16.msra.mxu0 %v1437_v55  ;;  %v1468_v55 = vld [vmem:[#allocation2 + $0x220] sm:$0xff]  }
 0x1d0   :  { %1305 = vmatprep.subr.bf16.mxu0 %v1520_v0 }
 0x1d3   :  { %1306 = vmatpush3.bf16.msra.mxu0 %v1438_v56  ;;  %v1469_v56 = vld [vmem:[#allocation2 + $0x218] sm:$0xff]  }
 0x1d4   :  { %1307 = vmatprep.subr.bf16.mxu0 %v1520_v0 }
 0x1d7   :  { %1308 = vmatpush3.bf16.msra.mxu0 %v1439_v2 }
 0x1d8   :  { %1309 = vmatprep.subr.bf16.mxu0 %v1520_v0 }
 0x1db   :  { %1310 = vmatpush3.bf16.msra.mxu0 %v1440_v3  ;;  %v1471_v3 = vld [vmem:[#allocation2 + $0x208] sm:$0xff]  }
 0x1dc   :  { %1335 = vmatprep.subr.bf16.mxu0 %v1520_v0 }
 0x27e   :  { %v359_v58 = vpop.f32.mrf.mxu0 }
 0x27f   :  { %v360_v59 = vadd.f32 %v1071_v57, %v359_v58  ;;  %v1470_v57 = vld [vmem:[#allocation2 + $0x210] sm:$0xff]   ;;  %v1107_v58 = vld [vmem:[%s1671_s2 + $0x6] ss:$0 sm:$0xff] }
 0x280   :  { %v1273_v60 = vpop.f32.mrf.mxu0 }
 0x281   :  { %v365_v61 = vmax.f32 %v360_v59, 0.0 }
 0x282   :  { %v362_v62 = vpop.f32.mrf.mxu0 }
 0x283   :  { %v384_v63 = vpack.c.bf16 %v365_v61, %v365_v61 }
 0x284   :  { %v1274_v1 = vpop.f32.mrf.mxu0 }
 0x285   :  { %1292 = vmatmul.mubr.bf16.vlgmr.msra.gmra.mxu1 %v384_v63 }
 0x286   :  { %1331 = vmatprep.mubr.msk.bf16.mxu1 %vm1521_vm0, %v1520_v0  ;;  %1316 = vmatpush3.bf16.msra.mxu1 %v1441_v4  ;;  %v1472_v4 = vld [vmem:[#allocation2 + $0x200] sm:$0xff]  }
 0x287   :  { %1317 = vmatprep.subr.bf16.mxu1 %v1520_v0 }
 0x28a   :  { %1318 = vmatpush3.bf16.msra.mxu1 %v1442_v5  ;;  %v1116_v5 = vld [vmem:[%s1671_s2 + $0x7] ss:$0 sm:$0xff] }
 0x28b   :  { %1319 = vmatprep.subr.bf16.mxu1 %v1520_v0 }
 0x28e   :  { %1320 = vmatpush3.bf16.msra.mxu1 %v1443_v6 }
 0x28f   :  { %1321 = vmatprep.subr.bf16.mxu1 %v1520_v0 }
 0x292   :  { %1322 = vmatpush3.bf16.msra.mxu1 %v1444_v7 }
 0x293   :  { %1323 = vmatprep.subr.bf16.mxu1 %v1520_v0 }
 0x296   :  { %1324 = vmatpush3.bf16.msra.mxu1 %v1445_v8 }
 0x297   :  { %1325 = vmatprep.subr.bf16.mxu1 %v1520_v0 }
 0x29a   :  { %1326 = vmatpush3.bf16.msra.mxu1 %v1446_v9 }
 0x29b   :  { %1327 = vmatprep.subr.bf16.mxu1 %v1520_v0 }
 0x29e   :  { %1328 = vmatpush3.bf16.msra.mxu1 %v1447_v18 }
 0x29f   :  { %1329 = vmatprep.subr.bf16.mxu1 %v1520_v0 }
 0x2a2   :  { %1330 = vmatpush3.bf16.msra.mxu1 %v1448_v19 }
 0x2a3   :  { %1355 = vmatprep.subr.bf16.mxu1 %v1520_v0 }
 0x345   :  { %v471_v11 = vpop.f32.mrf.mxu1 }
 0x346   :  { %v472_v12 = vadd.f32 %v1080_v10, %v471_v11 }
 0x347   :  { %v1293_v13 = vpop.f32.mrf.mxu1 }
 0x348   :  { %v477_v14 = vmax.f32 %v472_v12, 0.0  ;;  %v1125_v13 = vld [vmem:[%s1671_s2 + $0x8] ss:$0 sm:$0xff] }
 0x349   :  { %v474_v15 = vpop.f32.mrf.mxu1 }
 0x34a   :  { %v496_v16 = vpack.c.bf16 %v477_v14, %v477_v14 }
 0x34b   :  { %v1294_v17 = vpop.f32.mrf.mxu1 }
 0x34c   :  { %1312 = vmatmul.mubr.bf16.vlgmr.msra.gmra.mxu0 %v496_v16 }
 0x34d   :  { %1351 = vmatprep.mubr.msk.bf16.mxu0 %vm1521_vm0, %v1520_v0  ;;  %1336 = vmatpush3.bf16.msra.mxu0 %v1449_v20 }
 0x34e   :  { %1337 = vmatprep.subr.bf16.mxu0 %v1520_v0 }
 0x351   :  { %1338 = vmatpush3.bf16.msra.mxu0 %v1450_v21 }
 0x352   :  { %1339 = vmatprep.subr.bf16.mxu0 %v1520_v0 }
 0x355   :  { %1340 = vmatpush3.bf16.msra.mxu0 %v1451_v22 }
 0x356   :  { %1341 = vmatprep.subr.bf16.mxu0 %v1520_v0 }
 0x359   :  { %1342 = vmatpush3.bf16.msra.mxu0 %v1452_v23 }
 0x35a   :  { %1343 = vmatprep.subr.bf16.mxu0 %v1520_v0 }
 0x35d   :  { %1344 = vmatpush3.bf16.msra.mxu0 %v1453_v24 }
 0x35e   :  { %1345 = vmatprep.subr.bf16.mxu0 %v1520_v0 }
 0x361   :  { %1346 = vmatpush3.bf16.msra.mxu0 %v1454_v25 }
 0x362   :  { %1347 = vmatprep.subr.bf16.mxu0 %v1520_v0 }
 0x365   :  { %1348 = vmatpush3.bf16.msra.mxu0 %v1455_v34 }
 0x366   :  { %1349 = vmatprep.subr.bf16.mxu0 %v1520_v0 }
 0x369   :  { %1350 = vmatpush3.bf16.msra.mxu0 %v1456_v35 }
 0x36a   :  { %1375 = vmatprep.subr.bf16.mxu0 %v1520_v0 }
 0x40c   :  { %v583_v27 = vpop.f32.mrf.mxu0 }
 0x40d   :  { %v584_v28 = vadd.f32 %v1089_v26, %v583_v27 }
 0x40e   :  { %v1313_v29 = vpop.f32.mrf.mxu0 }
 0x40f   :  { %v589_v30 = vmax.f32 %v584_v28, 0.0 }
 0x410   :  { %v586_v31 = vpop.f32.mrf.mxu0 }
 0x411   :  { %v608_v32 = vpack.c.bf16 %v589_v30, %v589_v30 }
 0x412   :  { %v1314_v33 = vpop.f32.mrf.mxu0 }
 0x413   :  { %1332 = vmatmul.mubr.bf16.vlgmr.msra.gmra.mxu1 %v608_v32 }
 0x414   :  { %1371 = vmatprep.mubr.msk.bf16.mxu1 %vm1521_vm0, %v1520_v0  ;;  %1356 = vmatpush3.bf16.msra.mxu1 %v1457_v36 }
 0x415   :  { %1357 = vmatprep.subr.bf16.mxu1 %v1520_v0 }
 0x418   :  { %1358 = vmatpush3.bf16.msra.mxu1 %v1458_v37 }
 0x419   :  { %1359 = vmatprep.subr.bf16.mxu1 %v1520_v0 }
 0x41c   :  { %1360 = vmatpush3.bf16.msra.mxu1 %v1459_v38 }
 0x41d   :  { %1361 = vmatprep.subr.bf16.mxu1 %v1520_v0 }
 0x420   :  { %1362 = vmatpush3.bf16.msra.mxu1 %v1460_v39 }
 0x421   :  { %1363 = vmatprep.subr.bf16.mxu1 %v1520_v0 }
 0x424   :  { %1364 = vmatpush3.bf16.msra.mxu1 %v1461_v40 }
 0x425   :  { %1365 = vmatprep.subr.bf16.mxu1 %v1520_v0 }
 0x428   :  { %1366 = vmatpush3.bf16.msra.mxu1 %v1462_v41 }
 0x429   :  { %1367 = vmatprep.subr.bf16.mxu1 %v1520_v0 }
 0x42c   :  { %1368 = vmatpush3.bf16.msra.mxu1 %v1463_v50 }
 0x42d   :  { %1369 = vmatprep.subr.bf16.mxu1 %v1520_v0 }
 0x430   :  { %1370 = vmatpush3.bf16.msra.mxu1 %v1464_v51 }
 0x4d3   :  { %v695_v43 = vpop.f32.mrf.mxu1 }
 0x4d4   :  { %v696_v44 = vadd.f32 %v1098_v42, %v695_v43 }
 0x4d5   :  { %v1333_v45 = vpop.f32.mrf.mxu1 }
 0x4d6   :  { %v701_v46 = vmax.f32 %v696_v44, 0.0 }
 0x4d7   :  { %v698_v47 = vpop.f32.mrf.mxu1 }
 0x4d8   :  { %v720_v48 = vpack.c.bf16 %v701_v46, %v701_v46 }
 0x4d9   :  { %v1334_v49 = vpop.f32.mrf.mxu1 }
 0x4da   :  { %1352 = vmatmul.mubr.bf16.vlgmr.msra.gmra.mxu0 %v720_v48 }
 0x4db   :  { %1391 = vmatprep.mubr.msk.bf16.mxu0 %vm1521_vm0, %v1520_v0  ;;  %1376 = vmatpush3.bf16.msra.mxu0 %v1465_v52 }
 0x4dc   :  { %1377 = vmatprep.subr.bf16.mxu0 %v1520_v0 }
 0x4df   :  { %1378 = vmatpush3.bf16.msra.mxu0 %v1466_v53 }
 0x4e0   :  { %1379 = vmatprep.subr.bf16.mxu0 %v1520_v0 }
 0x4e3   :  { %1380 = vmatpush3.bf16.msra.mxu0 %v1467_v54 }
 0x4e4   :  { %1381 = vmatprep.subr.bf16.mxu0 %v1520_v0 }
 0x4e7   :  { %1382 = vmatpush3.bf16.msra.mxu0 %v1468_v55 }
 0x4e8   :  { %1383 = vmatprep.subr.bf16.mxu0 %v1520_v0 }
 0x4eb   :  { %1384 = vmatpush3.bf16.msra.mxu0 %v1469_v56 }
 0x4ec   :  { %1385 = vmatprep.subr.bf16.mxu0 %v1520_v0 }
 0x4ef   :  { %1386 = vmatpush3.bf16.msra.mxu0 %v1470_v57 }
 0x4f0   :  { %1387 = vmatprep.subr.bf16.mxu0 %v1520_v0 }
 0x4f3   :  { %1388 = vmatpush3.bf16.msra.mxu0 %v1471_v3 }
 0x4f4   :  { %1389 = vmatprep.subr.bf16.mxu0 %v1520_v0 }
 0x4f7   :  { %1390 = vmatpush3.bf16.msra.mxu0 %v1472_v4 }
 0x59a   :  { %v807_v59 = vpop.f32.mrf.mxu0 }
 0x59b   :  { %v808_v60 = vadd.f32 %v1107_v58, %v807_v59 }
 0x59c   :  { %v1353_v61 = vpop.f32.mrf.mxu0 }
 0x59d   :  { %v813_v62 = vmax.f32 %v808_v60, 0.0 }
 0x59e   :  { %v810_v63 = vpop.f32.mrf.mxu0 }
 0x59f   :  { %v832_v1 = vpack.c.bf16 %v813_v62, %v813_v62 }
 0x5a0   :  { %v1354_v2 = vpop.f32.mrf.mxu0 }
 0x5a1   :  { %1372 = vmatmul.mubr.bf16.vlgmr.msra.gmra.mxu1 %v832_v1 }
 0x661   :  { %v919_v6 = vpop.f32.mrf.mxu1 }
 0x662   :  { %v920_v7 = vadd.f32 %v1116_v5, %v919_v6 }
 0x663   :  { %v1373_v8 = vpop.f32.mrf.mxu1 }
 0x664   :  { %v925_v9 = vmax.f32 %v920_v7, 0.0 }
 0x665   :  { %v922_v10 = vpop.f32.mrf.mxu1 }
 0x666   :  { %v944_v11 = vpack.c.bf16 %v925_v9, %v925_v9 }
 0x667   :  { %v1374_v12 = vpop.f32.mrf.mxu1 }
 0x668   :  { %1392 = vmatmul.mubr.bf16.vlgmr.msra.gmra.mxu0 %v944_v11 }
 0x728   :  { %v1031_v0 = vpop.f32.mrf.mxu0 }
 0x729   :  { %v1032_v14 = vadd.f32 %v1125_v13, %v1031_v0 }
 0x72a   :  { %v1393_v15 = vpop.f32.mrf.mxu0 }
 0x72b   :  { %1037 = vst [vmem:[#allocation5] sm:$0xff] %v1032_v14 }
 0x72c   :  { %v1034_v16 = vpop.f32.mrf.mxu0 }
 0x72d   :  { %1504 = shalt.err (!%p1501_p9)
}
 0x72e   :  { %1047 = dma.vmem_to_hbm [thread:$0]  %s1045_s11, 128, %s1672_s3, [#allocation4]   ;;  %v1394_v17 = vpop.f32.mrf.mxu0 }
 0x72f   :  { %1515 = dma.done.wait [#allocation4], 128  }
 0x730   :  { %1516 = vsyncadd [#allocation4], 4294967168 }
 0x731   :  { %1051 = vsyncpa [#allocation3], 1 }
 0x732   :  { %1052 = vsyncpa [#allocation4], 1 }

</bundles_post_ra>
